<compile_context>
chip_gen: v5e
topology: v5e:2x2
jax: 0.10.0
libtpu: 0.0.40
codegen_flags: <defaults>
</compile_context>

<pallas_src>
import functools
import math

import jax
import jax.numpy as jnp
from jax.experimental import pallas as pl
from jax.experimental.pallas import tpu as pltpu


def _round_up(x: int, m: int) -> int:
    return ((x + m - 1) // m) * m


def _embed_kernel(tok_ref, table_ref, out_ref, *, scale, vocab_size):
    # tok_ref:   (T, 1) int32 token ids for this block.
    # table_ref: (V, E) embedding table, VMEM-resident across all grid steps.
    # out_ref:   (T, E) output block (sublane/lane dense).
    tok = jnp.clip(tok_ref[...], 0, vocab_size - 1)            # bounds safety
    t = tok.shape[0]
    col = jax.lax.broadcasted_iota(jnp.int32, (t, vocab_size), 1)
    # One-hot with sqrt(emb_size) folded in -> MXU does gather + scale at once.
    onehot = jnp.where(col == tok, jnp.float32(scale), jnp.float32(0.0))
    out_ref[...] = jnp.dot(
        onehot, table_ref[...].astype(jnp.float32),
        preferred_element_type=jnp.float32,
    ).astype(out_ref.dtype)


def token_embedding(tokens: jax.Array, emb_table: jax.Array,
                    *, block_tokens: int = 256) -> jax.Array:
    """Equivalent of nn.Embedding(tokens.long()) * sqrt(emb_size)."""
    B, S = tokens.shape
    V, E = emb_table.shape
    N = B * S
    scale = math.sqrt(float(E))
    dtype_bytes = jnp.dtype(emb_table.dtype).itemsize

    # T tokens per grid step; multiple of 8 for dense f32 sublanes.
    T = min(block_tokens, _round_up(N, 8))
    N_pad = _round_up(N, T)

    tok_flat = tokens.reshape(N).astype(jnp.int32)
    if N_pad != N:
        tok_flat = jnp.pad(tok_flat, (0, N_pad - N))   # pad with a valid id (0)
    tok_col = tok_flat.reshape(N_pad, 1)

    grid = (N_pad // T,)
    cost = pl.CostEstimate(
        flops=2 * N_pad * V * E,
        transcendentals=0,
        bytes_accessed=N_pad * 4 + V * E * dtype_bytes + N_pad * E * dtype_bytes,
    )

    out_flat = pl.pallas_call(
        functools.partial(_embed_kernel, scale=scale, vocab_size=V),
        out_shape=jax.ShapeDtypeStruct((N_pad, E), emb_table.dtype),
        grid_spec=pltpu.PrefetchScalarGridSpec(
            num_scalar_prefetch=0,
            grid=grid,
            in_specs=[
                pl.BlockSpec((T, 1), lambda i: (i, 0)),   # token ids, (T, 1)
                pl.BlockSpec((V, E), lambda i: (0, 0)),   # full table, resident
            ],
            out_specs=pl.BlockSpec((T, E), lambda i: (i, 0)),
        ),
        compiler_params=pltpu.CompilerParams(
            dimension_semantics=("parallel",)),
        cost_estimate=cost,
    )(tok_col, emb_table)

    return out_flat[:N].reshape(B, S, E)


if __name__ == "__main__":
    # Small, deterministic synthetic setup consistent with the module.
    VOCAB_SIZE = 64
    EMB_SIZE = 128          # lane-aligned embedding width
    PAD_IDX = 0             # stands in for voca2idex['<pad>']
    B, S = 2, 8

    key = jax.random.PRNGKey(0)
    k_emb, k_tok = jax.random.split(key)

    # nn.Embedding default init ~ N(0, 1); padding_idx row is zeroed at init.
    emb_table = jax.random.normal(k_emb, (VOCAB_SIZE, EMB_SIZE), dtype=jnp.float32)
    emb_table = emb_table.at[PAD_IDX].set(0.0)

    # Token ids, including some pad tokens.
    tokens = jax.random.randint(k_tok, (B, S), minval=0, maxval=VOCAB_SIZE,
                                dtype=jnp.int32)
    tokens = tokens.at[:, -2:].set(PAD_IDX)  # force trailing pads

    out = token_embedding(tokens, emb_table)
    out = jax.block_until_ready(out)

    # Pure-JAX reference for correctness.
    ref = jnp.take(emb_table, tokens, axis=0) * math.sqrt(float(EMB_SIZE))
    assert out.shape == (B, S, EMB_SIZE), out.shape
    assert jnp.allclose(out, ref, atol=1e-5, rtol=1e-5), "mismatch vs reference"
    # Padding rows must be exactly zero (zeroed padding_idx row).
    assert jnp.all(out[:, -2:, :] == 0.0)

    print("KERNEL_OK")
</pallas_src>

<mosaic_0001>
module attributes {stable_mosaic.version = 11 : i64} {
  func.func @_embed_kernel(%arg0: i32, %arg1: memref<16x1xi32, #tpu.memory_space<vmem>>, %arg2: memref<64x128xf32, #tpu.memory_space<vmem>>, %arg3: memref<16x128xf32, #tpu.memory_space<vmem>>) attributes {dimension_semantics = [#tpu.dimension_semantics<parallel>], iteration_bounds = array<i64: 1>, scalar_prefetch = 0 : i64, scratch_operands = 0 : i64, tpu.core_type = #tpu.core_type<tc>, window_params = [{transform_indices = @transform_0, window_bounds = array<i64: 16, 1>}, {pipeline_mode = #tpu.pipeline_mode<synchronous>, transform_indices = @transform_1, window_bounds = array<i64: 64, 128>}, {transform_indices = @transform_2, window_bounds = array<i64: 16, 128>}]} {
    %c0 = arith.constant 0 : index
    %c0_0 = arith.constant 0 : index
    %0 = vector.load %arg1[%c0, %c0_0] : memref<16x1xi32, #tpu.memory_space<vmem>>, vector<16x1xi32>
    %c0_i32 = arith.constant 0 : i32
    %c63_i32 = arith.constant 63 : i32
    %1 = vector.broadcast %c0_i32 : i32 to vector<16x1xi32>
    %2 = arith.maxsi %1, %0 : vector<16x1xi32>
    %3 = vector.broadcast %c63_i32 : i32 to vector<16x1xi32>
    %4 = arith.minsi %3, %2 : vector<16x1xi32>
    %5 = tpu.iota {dimensions = array<i32: 1>} : vector<16x64xi32>
    %6 = vector.broadcast %4 : vector<16x1xi32> to vector<16x64xi32>
    %7 = arith.cmpi eq, %5, %6 : vector<16x64xi32>
    %cst = arith.constant 11.3137083 : f32
    %cst_1 = arith.constant 0.000000e+00 : f32
    %8 = vector.broadcast %cst : f32 to vector<16x64xf32>
    %9 = vector.broadcast %cst_1 : f32 to vector<16x64xf32>
    %10 = arith.select %7, %8, %9 : vector<16x64xi1>, vector<16x64xf32>
    %c0_2 = arith.constant 0 : index
    %c0_3 = arith.constant 0 : index
    %11 = vector.load %arg2[%c0_2, %c0_3] : memref<64x128xf32, #tpu.memory_space<vmem>>, vector<64x128xf32>
    %cst_4 = arith.constant dense<0.000000e+00> : vector<16x128xf32>
    %12 = tpu.matmul %10, %11, %cst_4 {dimension_numbers = #tpu.dot_dimension_numbers<[1], [0], [0], [1], [0, 0, 1, 1], [], []>} : vector<16x64xf32>, vector<64x128xf32>, vector<16x128xf32> -> vector<16x128xf32>
    %c0_5 = arith.constant 0 : index
    %c0_6 = arith.constant 0 : index
    %13 = vector.load %arg3[%c0_5, %c0_6] : memref<16x128xf32, #tpu.memory_space<vmem>>, vector<16x128xf32>
    tpu.vector_store %arg3[%c0_5, %c0_6], %12 {strides = array<i32>} : memref<16x128xf32, #tpu.memory_space<vmem>>, vector<16x128xf32>,
    return
  }
  func.func @transform_0(%arg0: i32) -> (i32, i32) {
    %c0_i32 = arith.constant 0 : i32
    %c0_i32_0 = arith.constant 0 : i32
    return %arg0, %c0_i32 : i32, i32
  }
  func.func @transform_1(%arg0: i32) -> (i32, i32) {
    %c0_i32 = arith.constant 0 : i32
    %c0_i32_0 = arith.constant 0 : i32
    %c0_i32_1 = arith.constant 0 : i32
    return %c0_i32, %c0_i32_0 : i32, i32
  }
  func.func @transform_2(%arg0: i32) -> (i32, i32) {
    %c0_i32 = arith.constant 0 : i32
    %c0_i32_0 = arith.constant 0 : i32
    return %arg0, %c0_i32 : i32, i32
  }
}

</mosaic_0001>

<bundles_post_ra>
// kernel: tpu_custom_call.1
= control target key start
LH: loop header
LB: loop body
LE: loop exit
PB: predicated region body
PF: predicated region fallthrough
CT: control target
= control target key end

     0   :  { %7 = vsyncpa [#allocation3], 0  ;;  %s217_s0 = inlined_call_operand.vmem [shape: s32[16,1], index: 0, kind: input, shape index: {}]   ;;  %s218_s1 = inlined_call_operand.hbm [shape: f32[64,128], index: 1, kind: input, shape index: {}]   ;;  %s219_s2 = inlined_call_operand.hbm [shape: f32[16,128], index: 2, kind: output, shape index: {}]  }
   0x1   :  { %8 = vsyncpa [#allocation4], 0  ;;  %s15_s11 = sshll.u32 %s218_s1, 4  ;;  %s178_s12 = smov [#allocation2]   ;;  %s16_s11 = int_to_ptr.hbm [resolvable:$true] %s15_s11 }
   0x2   :  { %s17_s13 = sshll.u32 %s178_s12, 4  ;;  %s179_s14 = smov 128   ;;  %s18_s13 = int_to_ptr.vmem [resolvable:$true] %s17_s13 }
   0x3   :  { %s180_s15 = smov 8  }
   0x4   :  { %23 = dma.hbm_to_vmem [thread:$0]  %s16_s11, 1024, %s18_s13, [#allocation3], %s179_s14, %s179_s14, %s180_s15  }
   0x5   :  { %174 = dma.done.wait [#allocation3], 1024  }
   0x6   :  { %175 = vsyncadd [#allocation3], 4294966272  ;;  %v181_v0 = vmov 0   ;;  %v28_v1 = vld [vmem:[%s217_s0] sm:$0xff]  ;;  %v29_v2 = vld [vmem:[%s217_s0 + $0x8] sm:$0xff]  ;;  %v38_v15 = vlaneseq  ;;  %vm58_vm4 = vcmask 523264  }
   0x7   :  { %125 = vset.pattern.permute.xlu0 %v181_v0  ;;  %v57_v3 = vld [vmem:[#allocation2 + $0x38] sm:$0xff]  ;;  %vm30_vm0 = vcmp.gt.s32.totalorder %v28_v1, 0  ;;  %vm32_vm1 = vcmp.gt.s32.totalorder %v29_v2, 0  ;;  %v56_v4 = vld [vmem:[#allocation2 + $0x30] sm:$0xff]  ;;  %v55_v6 = vld [vmem:[#allocation2 + $0x28] sm:$0xff]  ;;  %v182_v18 = vmov 0.0  }
   0x8   :  { %73 = vmatpush.msra.mxu0 %v57_v3  ;;  %111 = vmatpush.msra.mxu1 %v57_v3  ;;  %v31_v5 = vsel %vm30_vm0, %v28_v1, 0  ;;  %v33_v8 = vsel %vm32_vm1, %v29_v2, 0  ;;  %v54_v9 = vld [vmem:[#allocation2 + $0x20] sm:$0xff]  ;;  %v53_v10 = vld [vmem:[#allocation2 + $0x18] sm:$0xff]  ;;  %v52_v11 = vld [vmem:[#allocation2 + $0x10] sm:$0xff]  ;;  %v39_v16 = vand.u32 127, %v38_v15 }
   0x9   :  { %vm34_vm2 = vcmp.lt.s32.totalorder %v31_v5, 63  ;;  %vm36_vm3 = vcmp.lt.s32.totalorder %v33_v8, 63  ;;  %v51_v13 = vld [vmem:[#allocation2 + $0x8] sm:$0xff]  ;;  %v50_v14 = vld [vmem:[#allocation2] sm:$0xff]  ;;  %s183_s0 = smov [#allocation5]   ;;  %s96_s22 = sshll.u32 %s219_s2, 4  ;;  %s97_s22 = int_to_ptr.hbm [resolvable:$true] %s96_s22 }
   0xa   :  { %74 = vmatpush.msra.mxu0 %v56_v4  ;;  %112 = vmatpush.msra.mxu1 %v56_v4  ;;  %v35_v7 = vsel %vm34_vm2, %v31_v5, 63  ;;  %v37_v12 = vsel %vm36_vm3, %v33_v8, 63  ;;  %s94_s19 = sshll.u32 %s183_s0, 4  ;;  %s95_s19 = int_to_ptr.vmem [resolvable:$true] %s94_s19 }
   0xb   :  { %41 = vperm.xlu0 %125, %v35_v7  }
   0xc   :  { %75 = vmatpush.msra.mxu0 %v55_v6  ;;  %113 = vmatpush.msra.mxu1 %v55_v6 }
   0xe   :  { %76 = vmatpush.msra.mxu0 %v54_v9  ;;  %114 = vmatpush.msra.mxu1 %v54_v9 }
  0x10   :  { %77 = vmatpush.msra.mxu0 %v53_v10  ;;  %115 = vmatpush.msra.mxu1 %v53_v10 }
  0x12   :  { %78 = vmatpush.msra.mxu0 %v52_v11  ;;  %116 = vmatpush.msra.mxu1 %v52_v11 }
  0x13   :  { %44 = vperm.xlu0 %125, %v37_v12  }
  0x14   :  { %79 = vmatpush.msra.mxu0 %v51_v13  ;;  %117 = vmatpush.msra.mxu1 %v51_v13 }
  0x16   :  { %80 = vmatpush.msra.mxu0 %v50_v14  ;;  %118 = vmatpush.msra.mxu1 %v50_v14 }
  0x7d   :  { %v42_v17 = vpop.permute.xlu0 %41 }
  0x7e   :  { %vm46_vm5 = vcmp.eq.s32.totalorder %v39_v16, %v42_v17 }
  0x7f   :  { %v48_v19 = vsel %vm46_vm5, 11.313708, %v182_v18 }
  0x80   :  { %109 = vmatmul.msk.f32.vlgmr.msra.gmra.mxu0 %vm58_vm4, %v48_v19 }
  0x85   :  { %v45_v20 = vpop.permute.xlu0 %44 }
  0x86   :  { %vm47_vm6 = vcmp.eq.s32.totalorder %v39_v16, %v45_v20 }
  0x87   :  { %v49_v21 = vsel %vm47_vm6, 11.313708, %v182_v18 }
  0x88   :  { %110 = vmatmul.msk.f32.vlgmr.msra.gmra.mxu1 %vm58_vm4, %v49_v21 }
  0xfd   :  { %v82_v22 = vpop.f32.mrf.mxu0 }
  0xfe   :  { %88 = vst [vmem:[#allocation5] sm:$0xff] %v82_v22 }
 0x105   :  { %v85_v23 = vpop.f32.mrf.mxu1 }
 0x106   :  { %89 = vst [vmem:[#allocation5 + $0x8] sm:$0xff] %v85_v23 }
 0x107   :  { %102 = dma.vmem_to_hbm [thread:$0]  %s95_s19, 256, %s97_s22, [#allocation4], %s179_s14, %s179_s14, %s180_s15  }
 0x108   :  { %176 = dma.done.wait [#allocation4], 256  }
 0x109   :  { %177 = vsyncadd [#allocation4], 4294967040 }
 0x10a   :  { %107 = vsyncpa [#allocation3], 1 }
 0x10b   :  { %108 = vsyncpa [#allocation4], 1 }

</bundles_post_ra>
